<compile_context>
chip_gen: v7x
topology: tpu7x:2x2x1
jax: 0.10.0
libtpu: 0.0.40
codegen_flags: <defaults>
</compile_context>

<pallas_src>
import functools

import jax
import jax.numpy as jnp
from jax.experimental import pallas as pl
from jax.experimental.pallas import tpu as pltpu


# --------------------------- small helpers ---------------------------

def _round_up(n, m):
    return ((n + m - 1) // m) * m


def _cdiv(a, b):
    return -(-a // b)


def _device_kind():
    try:
        return jax.devices()[0].device_kind.lower()
    except Exception:
        return ""


def _default_bf16_epilogue(kind=None):
    """bf16 VALU exists on v6e/v7x; keep f32 epilogues on v5e and older chips."""
    kind = _device_kind() if kind is None else kind
    return not any(v in kind for v in ("v2", "v3", "v4", "v5"))


def _vmem_budget_bytes(kind=None):
    """Generation-aware scoped-VMEM clamp."""
    kind = _device_kind() if kind is None else kind
    if any(v in kind for v in ("v5", "v6")):
        return 96 * 1024 * 1024          # 128 MiB physical VMEM on v5e / v6e
    return 48 * 1024 * 1024              # v7x (64 MiB physical) and unknown: safe default


def _tile_cap(kind=None):
    kind = _device_kind() if kind is None else kind
    if any(v in kind for v in ("v5", "v6")):
        return 16384
    return 8192


def _choose_tile_b(B, f_pad, bf16_epilogue, kind, fixed_param_bytes=0):
    """Pick tile_b from a VMEM budget and guarantee >=2 grid steps when B allows it."""
    budget = _vmem_budget_bytes(kind)
    cap = _tile_cap(kind)
    # Per-batch-element VMEM: double-buffered bf16 x column + f32 output column
    # + the largest chain of live intermediates (the (256, tile_b) h1 dominates).
    per_elem = 2 * f_pad * 2 + 2 * 4 + (2048 if bf16_epilogue else 3072)
    avail = budget - 2 * fixed_param_bytes - (4 << 20)      # weights double-buffered + slack
    vmem_cap = max(128, (avail // per_elem) // 128 * 128)
    # >= 2 grid steps whenever possible so both v7x TensorCores get work
    # (harmless on single-TC v5e/v6e: one extra ~0.35us grid step at most).
    want = max(128, _round_up(_cdiv(max(B, 1), 2), 128))
    return max(128, min(vmem_cap, cap, want))


# --------------------------- the kernel ---------------------------

def _mlp_kernel(x_ref,
                w1_ref, b1_ref, w2_ref, b2_ref, w3_ref, b3_ref,
                w4_ref, b4_ref, w5_ref, b5_ref,
                o_ref, *, bf16_epilogue):
    """Fused 5-layer MLP; activations are (features, TILE_B) with batch on lanes."""

    def hidden(h_in_bf16, w_ref, b_ref):
        # (out, in) @ (in, TILE_B) -> (out, TILE_B); f32 accumulation on the MXU.
        h = jnp.dot(w_ref[...], h_in_bf16, preferred_element_type=jnp.float32)
        if bf16_epilogue:
            # v6e / v7x: bias-add + ReLU on the bf16 VALU path; output stays bf16.
            return jnp.maximum(h.astype(jnp.bfloat16) + b_ref[...], 0)
        # v5e: f32 VALU epilogue; cast down only for the next MXU input.
        return jnp.maximum(h + b_ref[...], 0.0).astype(jnp.bfloat16)

    h = hidden(x_ref[...], w1_ref, b1_ref)       # (256, TILE_B)
    h = hidden(h, w2_ref, b2_ref)                # (128, TILE_B)
    h = hidden(h, w3_ref, b3_ref)                # (64,  TILE_B)

    # Layer 4: Linear(64, 32); epilogue kept in f32 (feeds the f32 reduce).
    h = jnp.dot(w4_ref[...], h, preferred_element_type=jnp.float32)   # (32, TILE_B)
    h = jnp.maximum(h + b4_ref[...], 0.0)

    # Layer 5: Linear(32, 1) as VPU multiply + sublane reduce -> lane-dense (1, TILE_B).
    w5 = w5_ref[...].astype(jnp.float32)                              # (32, 1)
    out = jnp.sum(h * w5, axis=0, keepdims=True) + b5_ref[0, 0]       # (1, TILE_B) f32
    o_ref[...] = out.astype(o_ref.dtype)


# --------------------------- parameters ---------------------------

def init_params(input_size, key):
    """PyTorch-layout parameters: list of (W (out,in), b (out,)) f32, nn.Linear-style init."""
    dims = [input_size, 256, 128, 64, 32, 1]
    params = []
    keys = jax.random.split(key, len(dims) - 1)
    for k, (d_in, d_out) in zip(keys, zip(dims[:-1], dims[1:])):
        kw, kb = jax.random.split(k)
        bound = 1.0 / (d_in ** 0.5)
        W = jax.random.uniform(kw, (d_out, d_in), jnp.float32, -bound, bound)
        b = jax.random.uniform(kb, (d_out,), jnp.float32, -bound, bound)
        params.append((W, b))
    return params


def prepare_params(params, *, bf16_epilogue=None):
    """Convert PyTorch-layout params into kernel operands.

    Weights stay (out, in), cast to bf16 (MXU-native); W1's input dim is pre-padded to a
    multiple of 16 (bf16 sublane pack). Biases 1-3 are (out, 1) columns in bf16 on
    v6e/v7x (bf16 epilogue) and f32 on v5e; b4 stays f32; b5 is a (1,1) f32 SMEM scalar.
    """
    if bf16_epilogue is None:
        bf16_epilogue = _default_bf16_epilogue()
    b_dtype = jnp.bfloat16 if bf16_epilogue else jnp.float32

    (W1, b1), (W2, b2), (W3, b3), (W4, b4), (W5, b5) = params
    F = W1.shape[1]
    f_pad = _round_up(F, 16)
    W1p = jnp.pad(W1, ((0, 0), (0, f_pad - F)))

    return (
        W1p.astype(jnp.bfloat16), b1.reshape(-1, 1).astype(b_dtype),
        W2.astype(jnp.bfloat16),  b2.reshape(-1, 1).astype(b_dtype),
        W3.astype(jnp.bfloat16),  b3.reshape(-1, 1).astype(b_dtype),
        W4.astype(jnp.bfloat16),  b4.reshape(-1, 1).astype(jnp.float32),
        W5.reshape(-1, 1).astype(jnp.bfloat16),        # (32, 1)
        b5.reshape(1, 1).astype(jnp.float32),          # (1, 1) -> SMEM scalar
    )


# --------------------------- forward wrappers ---------------------------

def sale_price_forward_t(x_t, kernel_params, *, tile_b=None):
    """Core entry point.

    x_t: the pre-transposed activation slab (F_pad, B) in bf16 (batch on the lane axis).
    Producers that can emit this layout directly pay zero extra HBM passes.
    """
    f_pad, B = x_t.shape
    w1, b1, w2, b2, w3, b3, w4, b4, w5, b5 = kernel_params
    assert w1.shape[1] == f_pad, (w1.shape, f_pad)
    H1, H2, H3, H4 = w1.shape[0], w2.shape[0], w3.shape[0], w4.shape[0]
    bf16_epilogue = (b1.dtype == jnp.bfloat16)

    kind = _device_kind()
    if tile_b is None:
        fixed = sum(p.size * p.dtype.itemsize for p in kernel_params)
        tile_b = _choose_tile_b(B, f_pad, bf16_epilogue, kind, fixed)
    tile_b = max(128, _round_up(tile_b, 128))

    num_tiles = _cdiv(B, tile_b)
    b_pad = num_tiles * tile_b
    if b_pad != B:
        x_t = jnp.pad(x_t, ((0, 0), (0, b_pad - B)))

    def const2(shape):
        # Whole-array block, constant index_map: DMA'd once, stays VMEM-resident.
        return pl.BlockSpec(shape, lambda i: (0, 0))

    in_specs = [
        pl.BlockSpec((f_pad, tile_b), lambda i: (0, i)),        # streamed lane-dense x tile
        # TODO(synk): if profiling on v5e shows exposed x DMA at large tile_b, bump this
        # spec to pipeline_mode=pl.Buffered(3).
        const2(w1.shape), const2(b1.shape),
        const2(w2.shape), const2(b2.shape),
        const2(w3.shape), const2(b3.shape),
        const2(w4.shape), const2(b4.shape),
        const2(w5.shape),
        pl.BlockSpec(memory_space=pltpu.MemorySpace.SMEM),      # b5 scalar
    ]
    out_specs = pl.BlockSpec((1, tile_b), lambda i: (0, i))     # lane-dense output row

    flops = 2 * b_pad * (f_pad * H1 + H1 * H2 + H2 * H3 + H3 * H4 + H4)
    bytes_accessed = (x_t.size * x_t.dtype.itemsize
                      + sum(p.size * p.dtype.itemsize for p in kernel_params)
                      + b_pad * 4)

    out = pl.pallas_call(
        functools.partial(_mlp_kernel, bf16_epilogue=bf16_epilogue),
        out_shape=jax.ShapeDtypeStruct((1, b_pad), jnp.float32),
        grid=(num_tiles,),
        in_specs=in_specs,
        out_specs=out_specs,
        compiler_params=pltpu.CompilerParams(
            dimension_semantics=("parallel",),                  # v7x: batch tiles over 2 TCs
            vmem_limit_bytes=int(_vmem_budget_bytes(kind)),     # generation-aware clamp
        ),
        cost_estimate=pl.CostEstimate(
            flops=int(flops), transcendentals=0, bytes_accessed=int(bytes_accessed)),
    )(x_t, *kernel_params)

    return out[0, :B].reshape(B, 1)


def sale_price_forward(x, kernel_params, *, tile_b=None):
    """Convenience entry: x is (B, F) float (PyTorch layout).

    Builds the lane-dense (F_pad, b_pad) bf16 slab with a SINGLE fused pad + transpose +
    cast expression (one HBM pass: read f32, write bf16), then calls the kernel.
    """
    B, F = x.shape
    w1, b1 = kernel_params[0], kernel_params[1]
    f_pad = w1.shape[1]
    assert F <= f_pad, (F, f_pad)
    bf16_epilogue = (b1.dtype == jnp.bfloat16)

    kind = _device_kind()
    if tile_b is None:
        fixed = sum(p.size * p.dtype.itemsize for p in kernel_params)
        tile_b = _choose_tile_b(B, f_pad, bf16_epilogue, kind, fixed)
    tile_b = max(128, _round_up(tile_b, 128))
    b_pad = _cdiv(B, tile_b) * tile_b

    x_t = jnp.pad(x, ((0, b_pad - B), (0, f_pad - F))).T.astype(jnp.bfloat16)
    out = sale_price_forward_t(x_t, kernel_params, tile_b=tile_b)
    return out[:B]


# --------------------------- references ---------------------------

def reference_forward(x, params):
    """Pure-f32 pure-JAX reference (PyTorch semantics, dropout = identity)."""
    h = x
    for W, b in params[:-1]:
        h = jnp.maximum(h @ W.T + b[None, :], 0.0)
    W5, b5 = params[-1]
    return h @ W5.T + b5[None, :]


def reference_forward_mixed(x, params, *, bf16_epilogue):
    """Pure-JAX reference mirroring the kernel's precision policy."""
    h = x.astype(jnp.bfloat16)
    for W, b in params[:3]:                                     # layers 1-3
        z = jax.lax.dot_general(h, W.astype(jnp.bfloat16), (((1,), (1,)), ((), ())),
                                preferred_element_type=jnp.float32)
        if bf16_epilogue:
            h = jnp.maximum(z.astype(jnp.bfloat16) + b.astype(jnp.bfloat16)[None, :], 0)
        else:
            h = jnp.maximum(z + b[None, :], 0.0).astype(jnp.bfloat16)
    W4, b4 = params[3]                                          # layer 4 (f32 epilogue)
    z = jax.lax.dot_general(h, W4.astype(jnp.bfloat16), (((1,), (1,)), ((), ())),
                            preferred_element_type=jnp.float32)
    h = jnp.maximum(z + b4[None, :], 0.0)
    W5, b5 = params[4]                                          # layer 5 (f32 reduce)
    w5f = W5.astype(jnp.bfloat16).astype(jnp.float32)           # (1, 32)
    return jnp.sum(h * w5f, axis=1, keepdims=True) + b5[None, :]


# --------------------------- demo / self-test ---------------------------

if __name__ == "__main__":
    key = jax.random.PRNGKey(0)
    k_x, k_p, k_x2 = jax.random.split(key, 3)

    input_size = 32
    batch = 8

    x = jax.random.normal(k_x, (batch, input_size), jnp.float32)
    torch_params = init_params(input_size, k_p)
    kparams = prepare_params(torch_params)
    bf16_epi = (kparams[1].dtype == jnp.bfloat16)

    # Single-tile path (small batch padded up to one lane-dense 128-wide tile).
    out = jax.jit(sale_price_forward)(x, kparams)
    out = jax.block_until_ready(out)
    assert out.shape == (batch, 1), out.shape

    ref_mixed = reference_forward_mixed(x, torch_params, bf16_epilogue=bf16_epi)
    ref_f32 = reference_forward(x, torch_params)
    assert jnp.allclose(out, ref_mixed, atol=1e-2, rtol=1e-2), \
        float(jnp.max(jnp.abs(out - ref_mixed)))
    assert jnp.allclose(out, ref_f32, atol=1e-1, rtol=1e-1), \
        float(jnp.max(jnp.abs(out - ref_f32)))

    # Multi-tile path (grid > 1) with a ragged batch that requires tail padding.
    batch2 = 300
    x2 = jax.random.normal(k_x2, (batch2, input_size), jnp.float32)
    out2 = jax.block_until_ready(sale_price_forward(x2, kparams, tile_b=128))
    assert out2.shape == (batch2, 1), out2.shape
    ref2 = reference_forward_mixed(x2, torch_params, bf16_epilogue=bf16_epi)
    assert jnp.allclose(out2, ref2, atol=1e-2, rtol=1e-2), \
        float(jnp.max(jnp.abs(out2 - ref2)))

    print("KERNEL_OK")
</pallas_src>

<mosaic_0001>
module attributes {stable_mosaic.version = 11 : i64} {
  func.func @_mlp_kernel(%arg0: i32, %arg1: memref<32x128xbf16, #tpu.memory_space<vmem>>, %arg2: memref<256x32xbf16, #tpu.memory_space<vmem>>, %arg3: memref<256x1xbf16, #tpu.memory_space<vmem>>, %arg4: memref<128x256xbf16, #tpu.memory_space<vmem>>, %arg5: memref<128x1xbf16, #tpu.memory_space<vmem>>, %arg6: memref<64x128xbf16, #tpu.memory_space<vmem>>, %arg7: memref<64x1xbf16, #tpu.memory_space<vmem>>, %arg8: memref<32x64xbf16, #tpu.memory_space<vmem>>, %arg9: memref<32x1xf32, #tpu.memory_space<vmem>>, %arg10: memref<32x1xbf16, #tpu.memory_space<vmem>>, %arg11: memref<1x1xf32, #tpu.memory_space<smem>>, %arg12: memref<1x128xf32, #tpu.memory_space<vmem>>) attributes {dimension_semantics = [#tpu.dimension_semantics<parallel>], iteration_bounds = array<i64: 1>, scalar_prefetch = 0 : i64, scratch_operands = 0 : i64, tpu.core_type = #tpu.core_type<tc>, window_params = [{transform_indices = @transform_0, window_bounds = array<i64: 32, 128>}, {pipeline_mode = #tpu.pipeline_mode<synchronous>, transform_indices = @transform_1, window_bounds = array<i64: 256, 32>}, {pipeline_mode = #tpu.pipeline_mode<synchronous>, transform_indices = @transform_2, window_bounds = array<i64: 256, 1>}, {pipeline_mode = #tpu.pipeline_mode<synchronous>, transform_indices = @transform_3, window_bounds = array<i64: 128, 256>}, {pipeline_mode = #tpu.pipeline_mode<synchronous>, transform_indices = @transform_4, window_bounds = array<i64: 128, 1>}, {pipeline_mode = #tpu.pipeline_mode<synchronous>, transform_indices = @transform_5, window_bounds = array<i64: 64, 128>}, {pipeline_mode = #tpu.pipeline_mode<synchronous>, transform_indices = @transform_6, window_bounds = array<i64: 64, 1>}, {pipeline_mode = #tpu.pipeline_mode<synchronous>, transform_indices = @transform_7, window_bounds = array<i64: 32, 64>}, {pipeline_mode = #tpu.pipeline_mode<synchronous>, transform_indices = @transform_8, window_bounds = array<i64: 32, 1>}, {pipeline_mode = #tpu.pipeline_mode<synchronous>, transform_indices = @transform_9, window_bounds = array<i64: 32, 1>}, {transform_indices = @transform_10, window_bounds = array<i64: 1, 1>}, {transform_indices = @transform_11, window_bounds = array<i64: 1, 128>}]} {
    %c0 = arith.constant 0 : index
    %c0_0 = arith.constant 0 : index
    %0 = vector.load %arg1[%c0, %c0_0] : memref<32x128xbf16, #tpu.memory_space<vmem>>, vector<32x128xbf16>
    %c0_1 = arith.constant 0 : index
    %c0_2 = arith.constant 0 : index
    %1 = vector.load %arg2[%c0_1, %c0_2] : memref<256x32xbf16, #tpu.memory_space<vmem>>, vector<256x32xbf16>
    %cst = arith.constant dense<0.000000e+00> : vector<256x128xf32>
    %2 = tpu.matmul %1, %0, %cst {dimension_numbers = #tpu.dot_dimension_numbers<[1], [0], [0], [1], [0, 0, 1, 1], [], []>} : vector<256x32xbf16>, vector<32x128xbf16>, vector<256x128xf32> -> vector<256x128xf32>
    %3 = arith.truncf %2 : vector<256x128xf32> to vector<256x128xbf16>
    %c0_3 = arith.constant 0 : index
    %c0_4 = arith.constant 0 : index
    %4 = vector.load %arg3[%c0_3, %c0_4] : memref<256x1xbf16, #tpu.memory_space<vmem>>, vector<256x1xbf16>
    %5 = vector.broadcast %4 : vector<256x1xbf16> to vector<256x128xbf16>
    %6 = arith.addf %3, %5 : vector<256x128xbf16>
    %cst_5 = arith.constant 0.000000e+00 : bf16
    %7 = vector.broadcast %cst_5 : bf16 to vector<256x128xbf16>
    %8 = arith.maximumf %6, %7 : vector<256x128xbf16>
    %c0_6 = arith.constant 0 : index
    %c0_7 = arith.constant 0 : index
    %9 = vector.load %arg4[%c0_6, %c0_7] : memref<128x256xbf16, #tpu.memory_space<vmem>>, vector<128x256xbf16>
    %cst_8 = arith.constant dense<0.000000e+00> : vector<128x128xf32>
    %10 = tpu.matmul %9, %8, %cst_8 {dimension_numbers = #tpu.dot_dimension_numbers<[1], [0], [0], [1], [0, 0, 1, 1], [], []>} : vector<128x256xbf16>, vector<256x128xbf16>, vector<128x128xf32> -> vector<128x128xf32>
    %11 = arith.truncf %10 : vector<128x128xf32> to vector<128x128xbf16>
    %c0_9 = arith.constant 0 : index
    %c0_10 = arith.constant 0 : index
    %12 = vector.load %arg5[%c0_9, %c0_10] : memref<128x1xbf16, #tpu.memory_space<vmem>>, vector<128x1xbf16>
    %13 = vector.broadcast %12 : vector<128x1xbf16> to vector<128x128xbf16>
    %14 = arith.addf %11, %13 : vector<128x128xbf16>
    %cst_11 = arith.constant 0.000000e+00 : bf16
    %15 = vector.broadcast %cst_11 : bf16 to vector<128x128xbf16>
    %16 = arith.maximumf %14, %15 : vector<128x128xbf16>
    %c0_12 = arith.constant 0 : index
    %c0_13 = arith.constant 0 : index
    %17 = vector.load %arg6[%c0_12, %c0_13] : memref<64x128xbf16, #tpu.memory_space<vmem>>, vector<64x128xbf16>
    %cst_14 = arith.constant dense<0.000000e+00> : vector<64x128xf32>
    %18 = tpu.matmul %17, %16, %cst_14 {dimension_numbers = #tpu.dot_dimension_numbers<[1], [0], [0], [1], [0, 0, 1, 1], [], []>} : vector<64x128xbf16>, vector<128x128xbf16>, vector<64x128xf32> -> vector<64x128xf32>
    %19 = arith.truncf %18 : vector<64x128xf32> to vector<64x128xbf16>
    %c0_15 = arith.constant 0 : index
    %c0_16 = arith.constant 0 : index
    %20 = vector.load %arg7[%c0_15, %c0_16] : memref<64x1xbf16, #tpu.memory_space<vmem>>, vector<64x1xbf16>
    %21 = vector.broadcast %20 : vector<64x1xbf16> to vector<64x128xbf16>
    %22 = arith.addf %19, %21 : vector<64x128xbf16>
    %cst_17 = arith.constant 0.000000e+00 : bf16
    %23 = vector.broadcast %cst_17 : bf16 to vector<64x128xbf16>
    %24 = arith.maximumf %22, %23 : vector<64x128xbf16>
    %c0_18 = arith.constant 0 : index
    %c0_19 = arith.constant 0 : index
    %25 = vector.load %arg8[%c0_18, %c0_19] : memref<32x64xbf16, #tpu.memory_space<vmem>>, vector<32x64xbf16>
    %cst_20 = arith.constant dense<0.000000e+00> : vector<32x128xf32>
    %26 = tpu.matmul %25, %24, %cst_20 {dimension_numbers = #tpu.dot_dimension_numbers<[1], [0], [0], [1], [0, 0, 1, 1], [], []>} : vector<32x64xbf16>, vector<64x128xbf16>, vector<32x128xf32> -> vector<32x128xf32>
    %c0_21 = arith.constant 0 : index
    %c0_22 = arith.constant 0 : index
    %27 = vector.load %arg9[%c0_21, %c0_22] : memref<32x1xf32, #tpu.memory_space<vmem>>, vector<32x1xf32>
    %28 = vector.broadcast %27 : vector<32x1xf32> to vector<32x128xf32>
    %29 = arith.addf %26, %28 : vector<32x128xf32>
    %cst_23 = arith.constant 0.000000e+00 : f32
    %30 = vector.broadcast %cst_23 : f32 to vector<32x128xf32>
    %31 = arith.maximumf %29, %30 : vector<32x128xf32>
    %c0_24 = arith.constant 0 : index
    %c0_25 = arith.constant 0 : index
    %32 = vector.load %arg10[%c0_24, %c0_25] : memref<32x1xbf16, #tpu.memory_space<vmem>>, vector<32x1xbf16>
    %33 = arith.extf %32 : vector<32x1xbf16> to vector<32x1xf32>
    %34 = vector.broadcast %33 : vector<32x1xf32> to vector<32x128xf32>
    %35 = arith.mulf %31, %34 : vector<32x128xf32>
    %cst_26 = arith.constant dense<0.000000e+00> : vector<128xf32>
    %36 = vector.multi_reduction <add>, %35, %cst_26 [0] : vector<32x128xf32> to vector<128xf32>
    %37 = vector.shape_cast %36 : vector<128xf32> to vector<1x128xf32>
    %c0_27 = arith.constant 0 : index
    %c0_28 = arith.constant 0 : index
    %38 = memref.load %arg11[%c0_27, %c0_28] : memref<1x1xf32, #tpu.memory_space<smem>>
    %39 = vector.broadcast %38 : f32 to vector<1x128xf32>
    %40 = arith.addf %37, %39 : vector<1x128xf32>
    %c0_29 = arith.constant 0 : index
    %c0_30 = arith.constant 0 : index
    %41 = vector.load %arg12[%c0_29, %c0_30] : memref<1x128xf32, #tpu.memory_space<vmem>>, vector<1x128xf32>
    tpu.vector_store %arg12[%c0_29, %c0_30], %40 {strides = array<i32>} : memref<1x128xf32, #tpu.memory_space<vmem>>, vector<1x128xf32>,
    return
  }
  func.func @transform_0(%arg0: i32) -> (i32, i32) {
    %c0_i32 = arith.constant 0 : i32
    %c0_i32_0 = arith.constant 0 : i32
    return %c0_i32, %arg0 : i32, i32
  }
  func.func @transform_1(%arg0: i32) -> (i32, i32) {
    %c0_i32 = arith.constant 0 : i32
    %c0_i32_0 = arith.constant 0 : i32
    %c0_i32_1 = arith.constant 0 : i32
    return %c0_i32, %c0_i32_0 : i32, i32
  }
  func.func @transform_2(%arg0: i32) -> (i32, i32) {
    %c0_i32 = arith.constant 0 : i32
    %c0_i32_0 = arith.constant 0 : i32
    %c0_i32_1 = arith.constant 0 : i32
    return %c0_i32, %c0_i32_0 : i32, i32
  }
  func.func @transform_3(%arg0: i32) -> (i32, i32) {
    %c0_i32 = arith.constant 0 : i32
    %c0_i32_0 = arith.constant 0 : i32
    %c0_i32_1 = arith.constant 0 : i32
    return %c0_i32, %c0_i32_0 : i32, i32
  }
  func.func @transform_4(%arg0: i32) -> (i32, i32) {
    %c0_i32 = arith.constant 0 : i32
    %c0_i32_0 = arith.constant 0 : i32
    %c0_i32_1 = arith.constant 0 : i32
    return %c0_i32, %c0_i32_0 : i32, i32
  }
  func.func @transform_5(%arg0: i32) -> (i32, i32) {
    %c0_i32 = arith.constant 0 : i32
    %c0_i32_0 = arith.constant 0 : i32
    %c0_i32_1 = arith.constant 0 : i32
    return %c0_i32, %c0_i32_0 : i32, i32
  }
  func.func @transform_6(%arg0: i32) -> (i32, i32) {
    %c0_i32 = arith.constant 0 : i32
    %c0_i32_0 = arith.constant 0 : i32
    %c0_i32_1 = arith.constant 0 : i32
    return %c0_i32, %c0_i32_0 : i32, i32
  }
  func.func @transform_7(%arg0: i32) -> (i32, i32) {
    %c0_i32 = arith.constant 0 : i32
    %c0_i32_0 = arith.constant 0 : i32
    %c0_i32_1 = arith.constant 0 : i32
    return %c0_i32, %c0_i32_0 : i32, i32
  }
  func.func @transform_8(%arg0: i32) -> (i32, i32) {
    %c0_i32 = arith.constant 0 : i32
    %c0_i32_0 = arith.constant 0 : i32
    %c0_i32_1 = arith.constant 0 : i32
    return %c0_i32, %c0_i32_0 : i32, i32
  }
  func.func @transform_9(%arg0: i32) -> (i32, i32) {
    %c0_i32 = arith.constant 0 : i32
    %c0_i32_0 = arith.constant 0 : i32
    %c0_i32_1 = arith.constant 0 : i32
    return %c0_i32, %c0_i32_0 : i32, i32
  }
  func.func @transform_10(%arg0: i32) -> (i32, i32) {
    %c0_i32 = arith.constant 0 : i32
    %c0_i32_0 = arith.constant 0 : i32
    %c0_i32_1 = arith.constant 0 : i32
    return %c0_i32, %c0_i32_0 : i32, i32
  }
  func.func @transform_11(%arg0: i32) -> (i32, i32) {
    %c0_i32 = arith.constant 0 : i32
    %c0_i32_0 = arith.constant 0 : i32
    return %c0_i32, %arg0 : i32, i32
  }
}

</mosaic_0001>

<bundles_post_ra>
// kernel: sale_price_forward.1
= control target key start
LH: loop header
LB: loop body
LE: loop exit
PB: predicated region body
PF: predicated region fallthrough
CT: control target
= control target key end

     0   :  { %v2119_v0 = vmov 0   ;;  %vm168_vm0 = vcmask 261120   ;;  %vm1686_vm1 = vcmask 523264   ;;  %s2734_s2 = inlined_call_operand.vmem [shape: bf16[256,1], index: 2, kind: input, shape index: {}]   ;;  %s2735_s0 = inlined_call_operand.vmem [shape: bf16[32,128], index: 0, kind: input, shape index: {}]   ;;  %s2736_s1 = inlined_call_operand.vmem [shape: bf16[256,32], index: 1, kind: input, shape index: {}]   ;;  %s2737_s4 = inlined_call_operand.vmem [shape: bf16[128,1], index: 4, kind: input, shape index: {}]   ;;  %s2738_s6 = inlined_call_operand.vmem [shape: bf16[64,1], index: 6, kind: input, shape index: {}]   ;;  %s2739_s8 = inlined_call_operand.vmem [shape: f32[32,1], index: 8, kind: input, shape index: {}]   ;;  %s2740_s9 = inlined_call_operand.vmem [shape: bf16[32,1], index: 9, kind: input, shape index: {}]   ;;  %s2741_s3 = inlined_call_operand.vmem [shape: bf16[128,256], index: 3, kind: input, shape index: {}]   ;;  %s2742_s5 = inlined_call_operand.vmem [shape: bf16[64,128], index: 5, kind: input, shape index: {}]   ;;  %s2743_s7 = inlined_call_operand.vmem [shape: bf16[32,64], index: 7, kind: input, shape index: {}]   ;;  %s2744_s10 = inlined_call_operand.<no memory space> [shape: f32[1,1], index: 10, kind: input, shape index: {}]   ;;  %s2745_s11 = inlined_call_operand.vmem [shape: f32[1,128], index: 11, kind: output, shape index: {}]  }
   0x1   :  { %2065 = vset.pattern.permute.xlu1 %v2119_v0  ;;  %2064 = vset.pattern.permute.xlu0 %v2119_v0  ;;  %v410_v1 = vld [vmem:[%s2734_s2 + $0x40] sm:$0xf]  ;;  %v411_v4 = vld [vmem:[%s2734_s2 + $0x44] sm:$0xf]  ;;  %v2072_v6 = vld [vmem:[%s2735_s0 + $0x8] sm:$0xff]  }
   0x2   :  { %v394_v2 = vld [vmem:[%s2734_s2] sm:$0xf]  ;;  %620 = vperm.xlu0 %2064, %v410_v1   ;;  %v395_v5 = vld [vmem:[%s2734_s2 + $0x4] sm:$0xf]  ;;  %v412_v8 = vld [vmem:[%s2734_s2 + $0x48] sm:$0xf] }
   0x3   :  { %428 = vperm.xlu1 %2065, %v394_v2   ;;  %v2071_v3 = vld [vmem:[%s2735_s0] sm:$0xff]   ;;  %v413_v9 = vld [vmem:[%s2734_s2 + $0x4c] sm:$0xf]  ;;  %v2075_v11 = vld [vmem:[%s2736_s1 + $0x10] sm:$0xff]  }
   0x4   :  { %1990 = vmatprep.subr.bf16.mxu0 %v2071_v3  ;;  %v2073_v7 = vld [vmem:[%s2736_s1] sm:$0xff]   ;;  %v2074_v10 = vld [vmem:[%s2736_s1 + $0x8] sm:$0xff]   ;;  %v414_v14 = vld [vmem:[%s2734_s2 + $0x50] sm:$0xf] }
   0x5   :  { %1991 = vmatpush3.bf16.msra.mxu0 %v2071_v3  ;;  %1994 = vmatprep.mubr.msk.bf16.mxu0 %vm168_vm0, %v2073_v7  ;;  %v396_v12 = vld [vmem:[%s2734_s2 + $0x8] sm:$0xf]  ;;  %v397_v13 = vld [vmem:[%s2734_s2 + $0xc] sm:$0xf]  ;;  %v415_v15 = vld [vmem:[%s2734_s2 + $0x54] sm:$0xf] }
   0x6   :  { %632 = vperm.xlu0 %2064, %v411_v4   ;;  %1992 = vmatprep.subr.bf16.mxu0 %v2072_v6  ;;  %v2076_v16 = vld [vmem:[%s2736_s1 + $0x18] sm:$0xff]   ;;  %v2077_v17 = vld [vmem:[%s2736_s1 + $0x20] sm:$0xff]   ;;  %v398_v18 = vld [vmem:[%s2734_s2 + $0x10] sm:$0xf] }
   0x7   :  { %440 = vperm.xlu1 %2065, %v395_v5   ;;  %v399_v19 = vld [vmem:[%s2734_s2 + $0x14] sm:$0xf]  ;;  %v416_v20 = vld [vmem:[%s2734_s2 + $0x58] sm:$0xf]  ;;  %v417_v21 = vld [vmem:[%s2734_s2 + $0x5c] sm:$0xf] }
   0x8   :  { %v2078_v22 = vld [vmem:[%s2736_s1 + $0x28] sm:$0xff]   ;;  %v2079_v23 = vld [vmem:[%s2736_s1 + $0x30] sm:$0xff]   ;;  %v400_v24 = vld [vmem:[%s2734_s2 + $0x18] sm:$0xf] }
   0x9   :  { %1993 = vmatpush3.bf16.msra.mxu0 %v2072_v6  ;;  %v401_v25 = vld [vmem:[%s2734_s2 + $0x1c] sm:$0xf]  ;;  %v418_v26 = vld [vmem:[%s2734_s2 + $0x60] sm:$0xf]  ;;  %v419_v27 = vld [vmem:[%s2734_s2 + $0x64] sm:$0xf] }
   0xa   :  { %644 = vperm.xlu0 %2064, %v412_v8   ;;  %v2080_v28 = vld [vmem:[%s2736_s1 + $0x38] sm:$0xff]   ;;  %v2081_v29 = vld [vmem:[%s2736_s1 + $0x40] sm:$0xff]   ;;  %v420_v32 = vld [vmem:[%s2734_s2 + $0x68] sm:$0xf] }
   0xb   :  { %656 = vperm.xlu1 %2065, %v413_v9   ;;  %v402_v30 = vld [vmem:[%s2734_s2 + $0x20] sm:$0xf]  ;;  %v403_v31 = vld [vmem:[%s2734_s2 + $0x24] sm:$0xf]  ;;  %v421_v33 = vld [vmem:[%s2734_s2 + $0x6c] sm:$0xf] }
   0xc   :  { %1995 = vmatmul.mubr.msk.bf16.vlgmr.msra.gmra.mrb[0].mxu0 %vm168_vm0, %v2074_v10  ;;  %v2082_v34 = vld [vmem:[%s2736_s1 + $0x48] sm:$0xff]   ;;  %v2083_v35 = vld [vmem:[%s2736_s1 + $0x50] sm:$0xff]   ;;  %v2084_v40 = vld [vmem:[%s2736_s1 + $0x58] sm:$0xff]  }
   0xd   :  { %1998 = vmatprep.mubr.msk.bf16.mxu0 %vm168_vm0, %v2075_v11  ;;  %v404_v36 = vld [vmem:[%s2734_s2 + $0x28] sm:$0xf]  ;;  %v405_v37 = vld [vmem:[%s2734_s2 + $0x2c] sm:$0xf]  ;;  %v422_v38 = vld [vmem:[%s2734_s2 + $0x70] sm:$0xf] }
   0xe   :  { %452 = vperm.xlu0 %2064, %v396_v12   ;;  %v423_v39 = vld [vmem:[%s2734_s2 + $0x74] sm:$0xf]  ;;  %v2085_v41 = vld [vmem:[%s2736_s1 + $0x60] sm:$0xff]   ;;  %v406_v42 = vld [vmem:[%s2734_s2 + $0x30] sm:$0xf] }
   0xf   :  { %464 = vperm.xlu1 %2065, %v397_v13   ;;  %v407_v43 = vld [vmem:[%s2734_s2 + $0x34] sm:$0xf]  ;;  %v424_v44 = vld [vmem:[%s2734_s2 + $0x78] sm:$0xf]  ;;  %v425_v45 = vld [vmem:[%s2734_s2 + $0x7c] sm:$0xf] }
  0x10   :  { %v2086_v46 = vld [vmem:[%s2736_s1 + $0x68] sm:$0xff]   ;;  %v2087_v47 = vld [vmem:[%s2736_s1 + $0x70] sm:$0xff]   ;;  %v408_v48 = vld [vmem:[%s2734_s2 + $0x38] sm:$0xf] }
  0x11   :  { %v409_v49 = vld [vmem:[%s2734_s2 + $0x3c] sm:$0xf]  ;;  %v1139_v50 = vld [vmem:[%s2737_s4] sm:$0xf]  ;;  %v1140_v51 = vld [vmem:[%s2737_s4 + $0x4] sm:$0xf] }
  0x12   :  { %668 = vperm.xlu0 %2064, %v414_v14   ;;  %v2088_v52 = vld [vmem:[%s2736_s1 + $0x78] sm:$0xff]   ;;  %v1141_v53 = vld [vmem:[%s2737_s4 + $0x8] sm:$0xf]  ;;  %v1142_v54 = vld [vmem:[%s2737_s4 + $0xc] sm:$0xf] }
  0x13   :  { %680 = vperm.xlu1 %2065, %v415_v15   ;;  %v1143_v55 = vld [vmem:[%s2737_s4 + $0x10] sm:$0xf]  ;;  %v1144_v56 = vld [vmem:[%s2737_s4 + $0x14] sm:$0xf]  ;;  %v1145_v57 = vld [vmem:[%s2737_s4 + $0x18] sm:$0xf] }
  0x14   :  { %1999 = vmatmul.mubr.msk.bf16.gmra.mrb[4].mxu0 %vm168_vm0, %v2076_v16  ;;  %v1146_v58 = vld [vmem:[%s2737_s4 + $0x1c] sm:$0xf]  ;;  %v1147_v59 = vld [vmem:[%s2737_s4 + $0x20] sm:$0xf]  ;;  %v1148_v60 = vld [vmem:[%s2737_s4 + $0x24] sm:$0xf] }
  0x15   :  { %2002 = vmatprep.mubr.msk.bf16.mxu0 %vm168_vm0, %v2077_v17  ;;  %v1149_v61 = vld [vmem:[%s2737_s4 + $0x28] sm:$0xf]  ;;  %v1150_v62 = vld [vmem:[%s2737_s4 + $0x2c] sm:$0xf]  ;;  %v1151_v63 = vld [vmem:[%s2737_s4 + $0x30] sm:$0xf] }
  0x16   :  { %476 = vperm.xlu0 %2064, %v398_v18   ;;  %v1152_v1 = vld [vmem:[%s2737_s4 + $0x34] sm:$0xf]  ;;  %v1153_v2 = vld [vmem:[%s2737_s4 + $0x38] sm:$0xf]  ;;  %v1154_v3 = vld [vmem:[%s2737_s4 + $0x3c] sm:$0xf] }
  0x17   :  { %488 = vperm.xlu1 %2065, %v399_v19   ;;  %v1512_v4 = vld [vmem:[%s2738_s6] sm:$0xf]  ;;  %v1513_v5 = vld [vmem:[%s2738_s6 + $0x4] sm:$0xf]  ;;  %v1514_v6 = vld [vmem:[%s2738_s6 + $0x8] sm:$0xf] }
  0x18   :  { %v1515_v7 = vld [vmem:[%s2738_s6 + $0xc] sm:$0xf]  ;;  %v1516_v8 = vld [vmem:[%s2738_s6 + $0x10] sm:$0xf]  ;;  %v1517_v9 = vld [vmem:[%s2738_s6 + $0x14] sm:$0xf] }
  0x19   :  { %v1518_v10 = vld [vmem:[%s2738_s6 + $0x18] sm:$0xf]  ;;  %v1519_v11 = vld [vmem:[%s2738_s6 + $0x1c] sm:$0xf]  ;;  %v1652_v12 = vld [vmem:[%s2739_s8] sm:$0xff] }
  0x1a   :  { %692 = vperm.xlu0 %2064, %v416_v20   ;;  %v1653_v13 = vld [vmem:[%s2739_s8 + $0x8] sm:$0xff]  ;;  %v1882_v14 = vld [vmem:[%s2740_s9] sm:$0xff]   ;;  %v1654_v17 = vld [vmem:[%s2739_s8 + $0x10] sm:$0xff] }
  0x1b   :  { %704 = vperm.xlu1 %2065, %v417_v21   ;;  %v1883_v15 = vunpack.c.l.bf16 %v1882_v14  ;;  %v1884_v16 = vunpack.c.h.bf16 %v1882_v14  ;;  %v1655_v18 = vld [vmem:[%s2739_s8 + $0x18] sm:$0xff]  ;;  %v1889_v19 = vld [vmem:[%s2740_s9 + $0x8] sm:$0xff]  }
  0x1c   :  { %2003 = vmatmul.mubr.msk.bf16.gmra.mrb[8].mxu0 %vm168_vm0, %v2078_v22  ;;  %v1887_v21 = vunpack.c.l.bf16 %v1889_v19  ;;  %v1888_v22 = vunpack.c.h.bf16 %v1889_v19 }
  0x1d   :  { %2006 = vmatprep.mubr.msk.bf16.mxu0 %vm168_vm0, %v2079_v23  ;;  %v2066_v20 = vpack.i.bf16 %v1884_v16, %v1883_v15  ;;  %v2091_v23 = vld [vmem:[%s2741_s3 + $0x4] ss:$8 sps:$4 sm:$0xff]  }
  0x1e   :  { %500 = vperm.xlu0 %2064, %v400_v24   ;;  %1066 = vmatprep.mubr.bf16.mxu1 %v2091_v23 }
  0x1f   :  { %512 = vperm.xlu1 %2065, %v401_v25  }
  0x22   :  { %716 = vperm.xlu0 %2064, %v418_v26  }
  0x23   :  { %728 = vperm.xlu1 %2065, %v419_v27  }
  0x24   :  { %2007 = vmatmul.mubr.msk.bf16.gmra.mrb[12].mxu0 %vm168_vm0, %v2080_v28 }
  0x25   :  { %2010 = vmatprep.mubr.msk.bf16.mxu0 %vm168_vm0, %v2081_v29 }
  0x26   :  { %524 = vperm.xlu0 %2064, %v402_v30  }
  0x27   :  { %536 = vperm.xlu1 %2065, %v403_v31  }
  0x2a   :  { %740 = vperm.xlu0 %2064, %v420_v32  }
  0x2b   :  { %752 = vperm.xlu1 %2065, %v421_v33  }
  0x2c   :  { %2011 = vmatmul.mubr.msk.bf16.gmra.mrb[16].mxu0 %vm168_vm0, %v2082_v34 }
  0x2d   :  { %2014 = vmatprep.mubr.msk.bf16.mxu0 %vm168_vm0, %v2083_v35 }
  0x2e   :  { %548 = vperm.xlu0 %2064, %v404_v36  }
  0x2f   :  { %560 = vperm.xlu1 %2065, %v405_v37  }
  0x32   :  { %764 = vperm.xlu0 %2064, %v422_v38  }
  0x33   :  { %776 = vperm.xlu1 %2065, %v423_v39  }
  0x34   :  { %2015 = vmatmul.mubr.msk.bf16.gmra.mrb[20].mxu0 %vm168_vm0, %v2084_v40 }
  0x35   :  { %2018 = vmatprep.mubr.msk.bf16.mxu0 %vm168_vm0, %v2085_v41 }
  0x36   :  { %572 = vperm.xlu0 %2064, %v406_v42  }
  0x37   :  { %584 = vperm.xlu1 %2065, %v407_v43  }
  0x3a   :  { %788 = vperm.xlu0 %2064, %v424_v44  }
  0x3b   :  { %800 = vperm.xlu1 %2065, %v425_v45  }
  0x3c   :  { %2019 = vmatmul.mubr.msk.bf16.gmra.mrb[24].mxu0 %vm168_vm0, %v2086_v46 }
  0x3d   :  { %2022 = vmatprep.mubr.msk.bf16.mxu0 %vm168_vm0, %v2087_v47 }
  0x3e   :  { %596 = vperm.xlu0 %2064, %v408_v48  }
  0x3f   :  { %608 = vperm.xlu1 %2065, %v409_v49  }
  0x42   :  { %1157 = vperm.xlu0 %2064, %v1139_v50  }
  0x43   :  { %1169 = vperm.xlu1 %2065, %v1140_v51  }
  0x44   :  { %2023 = vmatmul.mubr.msk.bf16.gmra.mrb[28].mxu0 %vm168_vm0, %v2088_v52 }
  0x46   :  { %1181 = vperm.xlu0 %2064, %v1141_v53  }
  0x47   :  { %1193 = vperm.xlu1 %2065, %v1142_v54  }
  0x4a   :  { %1205 = vperm.xlu0 %2064, %v1143_v55   ;;  %v2120_v55 = vmov 839922192  }
  0x4b   :  { %1217 = vperm.xlu1 %2065, %v1144_v56   ;;  %v432_v56 = vunpack.c.l.s4 %v2120_v55 }
  0x4e   :  { %1229 = vperm.xlu0 %2064, %v1145_v57   ;;  %v434_v57 = vlaneseq }
  0x4f   :  { %1241 = vperm.xlu1 %2065, %v1146_v58  }
  0x52   :  { %1253 = vperm.xlu0 %2064, %v1147_v59  }
  0x53   :  { %1265 = vperm.xlu1 %2065, %v1148_v60  }
  0x56   :  { %1277 = vperm.xlu0 %2064, %v1149_v61  }
  0x57   :  { %1289 = vperm.xlu1 %2065, %v1150_v62   ;;  %v433_v62 = vunpack.c.0.s8 %v432_v56 }
  0x5a   :  { %1301 = vperm.xlu0 %2064, %v1151_v63   ;;  %v435_v63 = vshrl.u32 %v434_v57, 7 }
  0x5b   :  { %1313 = vperm.xlu1 %2065, %v1152_v1  }
  0x5e   :  { %1325 = vperm.xlu0 %2064, %v1153_v2  }
  0x5f   :  { %1337 = vperm.xlu1 %2065, %v1154_v3  }
  0x62   :  { %1522 = vperm.xlu0 %2064, %v1512_v4  }
  0x63   :  { %1534 = vperm.xlu1 %2065, %v1513_v5   ;;  %v2510_v5 = vsub.s32 %v433_v62, %v435_v63 }
  0x66   :  { %1546 = vperm.xlu0 %2064, %v1514_v6  }
  0x67   :  { %1558 = vperm.xlu1 %2065, %v1515_v7  }
  0x6a   :  { %1570 = vperm.xlu0 %2064, %v1516_v8  }
  0x6b   :  { %1582 = vperm.xlu1 %2065, %v1517_v9  }
  0x6e   :  { %1594 = vperm.xlu0 %2064, %v1518_v10  }
  0x6f   :  { %1606 = vperm.xlu1 %2065, %v1519_v11  }
  0x72   :  { %1658 = vperm.xlu0 %2064, %v1652_v12  }
  0x73   :  { %1663 = vperm.xlu1 %2065, %v1653_v13  }
  0x76   :  { %1668 = vperm.xlu0 %2064, %v1654_v17  }
  0x77   :  { %1673 = vperm.xlu1 %2065, %v1655_v18  }
  0x7a   :  { %2067 = vperm.xlu0 %2064, %v2066_v20  }
  0x7b   :  { %1766 = vperm.xlu1 %2065, %v1887_v21  }
  0x7e   :  { %1771 = vperm.xlu0 %2064, %v1888_v22  }
  0x81   :  { %v2442_v24 = vpop.permute.xlu0 %620 }
  0x82   :  { %v429_v25 = vpop.permute.xlu1 %428  ;;  %v629_v15 = vrot.slane %v2442_v24, %v2510_v5 }
  0x83   :  { %v437_v12 = vrot.slane %v429_v25, %v2510_v5 }
  0x85   :  { %v2444_v26 = vpop.permute.xlu0 %632 }
  0x86   :  { %v441_v27 = vpop.permute.xlu1 %440  ;;  %v641_v16 = vrot.slane %v2444_v26, %v2510_v5 }
  0x87   :  { %v449_v13 = vrot.slane %v441_v27, %v2510_v5 }
  0x89   :  { %v2446_v28 = vpop.permute.xlu0 %644  ;;  %v1829_v20 = vcombine.low %v437_v12, %v449_v13 }
  0x8a   :  { %v2448_v29 = vpop.permute.xlu1 %656  ;;  %v653_v17 = vrot.slane %v2446_v28, %v2510_v5  ;;  %v1837_v28 = vcombine.low %v629_v15, %v641_v16 }
  0x8b   :  { %v665_v18 = vrot.slane %v2448_v29, %v2510_v5 }
  0x8d   :  { %v2450_v30 = vpop.permute.xlu0 %452 }
  0x8e   :  { %v2452_v31 = vpop.permute.xlu1 %464  ;;  %v461_v21 = vrot.slane %v2450_v30, %v2510_v5 }
  0x8f   :  { %v473_v22 = vrot.slane %v2452_v31, %v2510_v5 }
  0x91   :  { %v2454_v32 = vpop.permute.xlu0 %668  ;;  %v1830_v29 = vcombine.low %v461_v21, %v473_v22 }
  0x92   :  { %v2456_v33 = vpop.permute.xlu1 %680  ;;  %v677_v30 = vrot.slane %v2454_v32, %v2510_v5 }
  0x93   :  { %v689_v13 = vrot.slane %v2456_v33, %v2510_v5 }
  0x95   :  { %v2458_v34 = vpop.permute.xlu0 %476 }
  0x96   :  { %v2460_v35 = vpop.permute.xlu1 %488  ;;  %v485_v31 = vrot.slane %v2458_v34, %v2510_v5 }
  0x97   :  { %v497_v63 = vrot.slane %v2460_v35, %v2510_v5 }
  0x99   :  { %v2464_v38 = vpop.permute.xlu0 %692 }
  0x9a   :  { %v2468_v40 = vpop.permute.xlu1 %704  ;;  %v701_v15 = vrot.slane %v2464_v38, %v2510_v5  ;;  %v1831_v38 = vcombine.low %v485_v31, %v497_v63 }
  0x9d   :  { %v2474_v45 = vpop.permute.xlu0 %500 }
  0x9e   :  { %v2478_v47 = vpop.permute.xlu1 %512 }
  0xa1   :  { %v2488_v52 = vpop.permute.xlu0 %716 }
  0xa2   :  { %v2490_v53 = vpop.permute.xlu1 %728 }
  0xa5   :  { %v2502_v1 = vpop.permute.xlu0 %524 }
  0xa6   :  { %v2506_v3 = vpop.permute.xlu1 %536 }
  0xa9   :  { %v2514_v7 = vpop.permute.xlu0 %740 }
  0xaa   :  { %v2518_v9 = vpop.permute.xlu1 %752 }
  0xad   :  { %v2540_v23 = vpop.permute.xlu0 %548 }
  0xae   :  { %v2542_v25 = vpop.permute.xlu1 %560 }
  0xb1   :  { %v2550_v12 = vpop.permute.xlu0 %764 }
  0xb2   :  { %v2558_v16 = vpop.permute.xlu1 %776 }
  0xdf   :  { %v2462_v36 = vpop.f32.mrb[0].mxu0 }
  0xe0   :  { %v251_v37 = vpop.f32.mrb[1].mxu0 }
  0xe1   :  { %v2466_v39 = vpop.f32.mrb[2].mxu0 }
  0xe2   :  { %v379_v41 = vpack.c.bf16 %v2466_v39, %v2462_v36  ;;  %v254_v42 = vpop.f32.mrb[3].mxu0 }
  0xe3   :  { %v378_v43 = vpack.c.bf16 %v254_v42, %v251_v37  ;;  %v1838_v42 = vcombine.low %v653_v17, %v665_v18 }
  0xe4   :  { %v907_v34 = vadd.bf16 %v1830_v29, %v379_v41  ;;  %v573_v41 = vpop.permute.xlu0 %572  ;;  %v545_v29 = vrot.slane %v2506_v3, %v2510_v5 }
  0xe5   :  { %v906_v56 = vadd.bf16 %v1829_v20, %v378_v43  ;;  %v713_v43 = vrot.slane %v2468_v40, %v2510_v5  ;;  %v509_v40 = vrot.slane %v2474_v45, %v2510_v5  ;;  %v521_v20 = vrot.slane %v2478_v47, %v2510_v5 }
  0xe6   :  { %v725_v47 = vrot.slane %v2488_v52, %v2510_v5 }
  0xe7   :  { %v2472_v44 = vpop.f32.mrb[4].mxu0  ;;  %v922_v18 = vmax.bf16 %v2119_v0, %v906_v56  ;;  %v1840_v36 = vcombine.low %v701_v15, %v713_v43 }
  0xe8   :  { %v2476_v46 = vpop.f32.mrb[5].mxu0  ;;  %v789_v31 = vpop.permute.xlu0 %788 }
  0xe9   :  { %v2480_v48 = vpop.f32.mrb[6].mxu0 }
  0xea   :  { %v381_v49 = vpack.c.bf16 %v2480_v48, %v2472_v44  ;;  %v2484_v50 = vpop.f32.mrb[7].mxu0 }
  0xeb   :  { %v380_v51 = vpack.c.bf16 %v2484_v50, %v2476_v46  ;;  %v737_v46 = vrot.slane %v2490_v53, %v2510_v5  ;;  %v749_v50 = vrot.slane %v2514_v7, %v2510_v5  ;;  %v557_v7 = vrot.slane %v2540_v23, %v2510_v5 }
  0xed   :  { %v1841_v44 = vcombine.low %v725_v47, %v737_v46 }
  0xef   :  { %v2492_v54 = vpop.f32.mrb[8].mxu0 }
  0xf0   :  { %v2494_v58 = vpop.f32.mrb[9].mxu0 }
  0xf1   :  { %v2496_v59 = vpop.f32.mrb[10].mxu0 }
  0xf2   :  { %v383_v60 = vpack.c.bf16 %v2496_v59, %v2492_v54  ;;  %v2500_v61 = vpop.f32.mrb[11].mxu0 }
  0xf3   :  { %v382_v2 = vpack.c.bf16 %v2500_v61, %v2494_v58 }
  0xf7   :  { %v2508_v4 = vpop.f32.mrb[12].mxu0 }
  0xf8   :  { %v2512_v6 = vpop.f32.mrb[13].mxu0 }
  0xf9   :  { %v2516_v8 = vpop.f32.mrb[14].mxu0 }
  0xfa   :  { %v385_v10 = vpack.c.bf16 %v2516_v8, %v2508_v4  ;;  %v2522_v11 = vpop.f32.mrb[15].mxu0  ;;  %v2094_v4 = vld [vmem:[%s2741_s3 + $0x10] ss:$8 sps:$4 sm:$0xff]   ;;  %v2095_v8 = vld [vmem:[%s2741_s3 + $0x24] ss:$8 sps:$4 sm:$0xff]  }
  0xfb   :  { %v384_v14 = vpack.c.bf16 %v2522_v11, %v2512_v6  ;;  %v2089_v11 = vld [vmem:[%s2741_s3] ss:$8 sps:$4 sm:$0xff]  }
  0xff   :  { %v2012_v19 = vpop.f32.mrb[16].mxu0 }
 0x100   :  { %v315_v24 = vpop.f32.mrb[17].mxu0 }
 0x101   :  { %v2013_v26 = vpop.f32.mrb[18].mxu0 }
 0x102   :  { %v387_v27 = vpack.c.bf16 %v2013_v26, %v2012_v19  ;;  %v318_v37 = vpop.f32.mrb[19].mxu0  ;;  %v908_v26 = vadd.bf16 %v1831_v38, %v380_v51  ;;  %v761_v51 = vrot.slane %v2518_v9, %v2510_v5  ;;  %v569_v9 = vrot.slane %v2542_v25, %v2510_v5  ;;  %v597_v38 = vpop.permute.xlu0 %596 }
 0x103   :  { %v386_v55 = vpack.c.bf16 %v318_v37, %v315_v24  ;;  %v1839_v24 = vcombine.low %v677_v30, %v689_v13  ;;  %v585_v37 = vpop.permute.xlu1 %584  ;;  %v773_v25 = vrot.slane %v2550_v12, %v2510_v5 }
 0x104   :  { %v915_v57 = vadd.bf16 %v1838_v42, %v387_v27  ;;  %v923_v27 = vmax.bf16 %v2119_v0, %v907_v34  ;;  %v1832_v42 = vcombine.low %v509_v40, %v521_v20  ;;  %v924_v3 = vmax.bf16 %v2119_v0, %v908_v26 }
 0x105   :  { %v914_v62 = vadd.bf16 %v1837_v28, %v386_v55  ;;  %v533_v55 = vrot.slane %v2502_v1, %v2510_v5  ;;  %v1842_v48 = vcombine.low %v749_v50, %v761_v51  ;;  %v1834_v34 = vcombine.low %v557_v7, %v569_v9  ;;  %v2098_v50 = vld [vmem:[%s2741_s3 + $0x34] ss:$8 sps:$4 sm:$0xff]   ;;  %v2100_v51 = vld [vmem:[%s2741_s3 + $0x30] ss:$8 sps:$4 sm:$0xff]   ;;  %v2113_v7 = vld [vmem:[%s2742_s5] sm:$0xff]  }
 0x106   :  { %v931_v33 = vmax.bf16 %v2119_v0, %v915_v57  ;;  %v909_v52 = vadd.bf16 %v1832_v42, %v381_v49  ;;  %2042 = vmatprep.mubr.bf16.mxu0 %v2113_v7  ;;  %v1158_v9 = vpop.permute.xlu0 %1157 }
 0x107   :  { %v2016_v32 = vpop.f32.mrb[20].mxu0  ;;  %v930_v17 = vmax.bf16 %v2119_v0, %v914_v62  ;;  %v1833_v30 = vcombine.low %v533_v55, %v545_v29  ;;  %v801_v49 = vpop.permute.xlu1 %800  ;;  %v911_v12 = vadd.bf16 %v1834_v34, %v383_v60 }
 0x108   :  { %v331_v35 = vpop.f32.mrb[21].mxu0  ;;  %v809_v58 = vrot.slane %v801_v49, %v2510_v5 }
 0x109   :  { %v2017_v19 = vpop.f32.mrb[22].mxu0  ;;  %1908 = vmatprep.subr.bf16.mxu1 %v930_v17  ;;  %v910_v43 = vadd.bf16 %v1833_v30, %v382_v2  ;;  %v927_v60 = vmax.bf16 %v2119_v0, %v911_v12  ;;  %v2112_v30 = vld [vmem:[%s2741_s3 + $0x70] ss:$8 sps:$4 sm:$0xff]  }
 0x10a   :  { %v389_v21 = vpack.c.bf16 %v2017_v19, %v2016_v32  ;;  %v334_v22 = vpop.f32.mrb[23].mxu0  ;;  %1909 = vmatpush3.bf16.msra.mxu1 %v922_v18  ;;  %v925_v32 = vmax.bf16 %v2119_v0, %v909_v52  ;;  %v593_v18 = vrot.slane %v585_v37, %v2510_v5  ;;  %v785_v19 = vrot.slane %v2558_v16, %v2510_v5  ;;  %v2104_v52 = vld [vmem:[%s2741_s3 + $0x54] ss:$8 sps:$4 sm:$0xff]   ;;  %v1182_v34 = vpop.permute.xlu0 %1181 }
 0x10b   :  { %v388_v39 = vpack.c.bf16 %v334_v22, %v331_v35  ;;  %1910 = vmatprep.subr.bf16.mxu1 %v931_v33  ;;  %v581_v35 = vrot.slane %v573_v41, %v2510_v5  ;;  %v797_v33 = vrot.slane %v789_v31, %v2510_v5  ;;  %v926_v20 = vmax.bf16 %v2119_v0, %v910_v43 }
 0x10c   :  { %v917_v28 = vadd.bf16 %v1840_v36, %v389_v21  ;;  %v609_v21 = vpop.permute.xlu1 %608  ;;  %v605_v36 = vrot.slane %v597_v38, %v2510_v5 }
 0x10d   :  { %v916_v45 = vadd.bf16 %v1839_v24, %v388_v39  ;;  %v1835_v24 = vcombine.low %v581_v35, %v593_v18  ;;  %v617_v39 = vrot.slane %v609_v21, %v2510_v5  ;;  %v1844_v37 = vcombine.low %v797_v33, %v809_v58 }
 0x10e   :  { %1911 = vmatpush3.bf16.msra.mxu1 %v923_v27  ;;  %v933_v53 = vmax.bf16 %v2119_v0, %v917_v28  ;;  %v1843_v27 = vcombine.low %v773_v25, %v785_v19  ;;  %v1190_v33 = vrot.slane %v1182_v34, %v2510_v5 }
 0x10f   :  { %v2020_v56 = vpop.f32.mrb[24].mxu0  ;;  %v932_v57 = vmax.bf16 %v2119_v0, %v916_v45  ;;  %v912_v59 = vadd.bf16 %v1835_v24, %v384_v14  ;;  %v1836_v42 = vcombine.low %v605_v36, %v617_v39  ;;  %v2092_v14 = vld [vmem:[%s2741_s3 + $0x14] ss:$8 sps:$4 sm:$0xff]  }
 0x110   :  { %v347_v1 = vpop.f32.mrb[25].mxu0 }
 0x111   :  { %v2021_v62 = vpop.f32.mrb[26].mxu0  ;;  %1912 = vmatprep.subr.bf16.mxu1 %v932_v57  ;;  %v913_v55 = vadd.bf16 %v1836_v42, %v385_v10  ;;  %v928_v29 = vmax.bf16 %v2119_v0, %v912_v59  ;;  %v2097_v10 = vld [vmem:[%s2741_s3 + $0x20] ss:$8 sps:$4 sm:$0xff]  }
 0x112   :  { %v391_v63 = vpack.c.bf16 %v2021_v62, %v2020_v56  ;;  %v350_v13 = vpop.f32.mrb[27].mxu0  ;;  %1913 = vmatpush3.bf16.msra.mxu1 %v924_v3  ;;  %v2101_v56 = vld [vmem:[%s2741_s3 + $0x44] ss:$8 sps:$4 sm:$0xff]   ;;  %v2103_v57 = vld [vmem:[%s2741_s3 + $0x40] ss:$8 sps:$4 sm:$0xff]  }
 0x113   :  { %v390_v15 = vpack.c.bf16 %v350_v13, %v347_v1  ;;  %1914 = vmatprep.subr.bf16.mxu1 %v933_v53  ;;  %v929_v6 = vmax.bf16 %v2119_v0, %v913_v55  ;;  %v2106_v1 = vld [vmem:[%s2741_s3 + $0x50] ss:$8 sps:$4 sm:$0xff]   ;;  %v2107_v3 = vld [vmem:[%s2741_s3 + $0x64] ss:$8 sps:$4 sm:$0xff]   ;;  %v2109_v62 = vld [vmem:[%s2741_s3 + $0x60] ss:$8 sps:$4 sm:$0xff]  }
 0x114   :  { %v919_v17 = vadd.bf16 %v1842_v48, %v391_v63  ;;  %v2110_v53 = vld [vmem:[%s2741_s3 + $0x74] ss:$8 sps:$4 sm:$0xff]   ;;  %v1170_v63 = vpop.permute.xlu1 %1169 }
 0x115   :  { %v918_v23 = vadd.bf16 %v1841_v44, %v390_v15  ;;  %v1166_v44 = vrot.slane %v1158_v9, %v2510_v5  ;;  %v1178_v48 = vrot.slane %v1170_v63, %v2510_v5 }
 0x116   :  { %1915 = vmatpush3.bf16.msra.mxu1 %v925_v32  ;;  %v935_v16 = vmax.bf16 %v2119_v0, %v919_v17 }
 0x117   :  { %v2024_v61 = vpop.f32.mrb[28].mxu0  ;;  %v934_v2 = vmax.bf16 %v2119_v0, %v918_v23  ;;  %v1861_v17 = vcombine.low %v1166_v44, %v1178_v48 }
 0x118   :  { %v363_v40 = vpop.f32.mrb[29].mxu0  ;;  %v1194_v18 = vpop.permute.xlu1 %1193 }
 0x119   :  { %v2025_v22 = vpop.f32.mrb[30].mxu0  ;;  %1916 = vmatprep.subr.bf16.mxu1 %v934_v2  ;;  %v1202_v58 = vrot.slane %v1194_v18, %v2510_v5 }
 0x11a   :  { %v393_v41 = vpack.c.bf16 %v2025_v22, %v2024_v61  ;;  %v366_v26 = vpop.f32.mrb[31].mxu0  ;;  %1917 = vmatpush3.bf16.msra.mxu1 %v926_v20  ;;  %v1206_v22 = vpop.permute.xlu0 %1205 }
 0x11b   :  { %v392_v54 = vpack.c.bf16 %v366_v26, %v363_v40  ;;  %1918 = vmatprep.subr.bf16.mxu1 %v935_v16  ;;  %v1862_v20 = vcombine.low %v1190_v33, %v1202_v58 }
 0x11c   :  { %v921_v28 = vadd.bf16 %v1844_v37, %v393_v41  ;;  %v1218_v36 = vpop.permute.xlu1 %1217  ;;  %v1214_v41 = vrot.slane %v1206_v22, %v2510_v5 }
 0x11d   :  { %v920_v45 = vadd.bf16 %v1843_v27, %v392_v54  ;;  %v1226_v26 = vrot.slane %v1218_v36, %v2510_v5 }
 0x11e   :  { %1919 = vmatpush3.bf16.msra.mxu1 %v927_v60  ;;  %v937_v46 = vmax.bf16 %v2119_v0, %v921_v28  ;;  %v1230_v42 = vpop.permute.xlu0 %1229 }
 0x11f   :  { %v936_v47 = vmax.bf16 %v2119_v0, %v920_v45  ;;  %v1863_v28 = vcombine.low %v1214_v41, %v1226_v26 }
 0x121   :  { %1920 = vmatprep.subr.bf16.mxu1 %v936_v47 }
 0x122   :  { %1921 = vmatpush3.bf16.msra.mxu1 %v928_v29  ;;  %v1242_v29 = vpop.permute.xlu1 %1241 }
 0x123   :  { %1922 = vmatprep.subr.bf16.mxu1 %v937_v46 }
 0x126   :  { %1923 = vmatpush3.bf16.msra.mxu1 %v929_v6  ;;  %v1238_v6 = vrot.slane %v1230_v42, %v2510_v5 }
 0x129   :  { %1067 = vmatmul.mubr.bf16.vlgmr.msra.gmra.mrb[0].mxu1 %v2089_v11  ;;  %v1250_v11 = vrot.slane %v1242_v29, %v2510_v5 }
 0x12a   :  { %1074 = vmatprep.mubr.bf16.mxu1 %v2092_v14 }
 0x131   :  { %1075 = vmatmul.mubr.bf16.gmra.mrb[4].mxu1 %v2094_v4 }
 0x132   :  { %1082 = vmatprep.mubr.bf16.mxu1 %v2095_v8 }
 0x139   :  { %1083 = vmatmul.mubr.bf16.gmra.mrb[8].mxu1 %v2097_v10 }
 0x13a   :  { %1090 = vmatprep.mubr.bf16.mxu1 %v2098_v50 }
 0x141   :  { %1091 = vmatmul.mubr.bf16.gmra.mrb[12].mxu1 %v2100_v51  ;;  %v1864_v51 = vcombine.low %v1238_v6, %v1250_v11 }
 0x142   :  { %1098 = vmatprep.mubr.bf16.mxu1 %v2101_v56 }
 0x149   :  { %1099 = vmatmul.mubr.bf16.gmra.mrb[16].mxu1 %v2103_v57  ;;  %v1254_v57 = vpop.permute.xlu0 %1253 }
 0x14a   :  { %1106 = vmatprep.mubr.bf16.mxu1 %v2104_v52 }
 0x151   :  { %1107 = vmatmul.mubr.bf16.gmra.mrb[20].mxu1 %v2106_v1 }
 0x152   :  { %1114 = vmatprep.mubr.bf16.mxu1 %v2107_v3  ;;  %v1266_v3 = vpop.permute.xlu1 %1265 }
 0x159   :  { %1115 = vmatmul.mubr.bf16.gmra.mrb[24].mxu1 %v2109_v62 }
 0x15a   :  { %1122 = vmatprep.mubr.bf16.mxu1 %v2110_v53  ;;  %v1262_v53 = vrot.slane %v1254_v57, %v2510_v5 }
 0x161   :  { %1123 = vmatmul.mubr.bf16.gmra.mrb[28].mxu1 %v2112_v30  ;;  %v1274_v30 = vrot.slane %v1266_v3, %v2510_v5 }
 0x163   :  { %v1865_v44 = vcombine.low %v1262_v53, %v1274_v30 }
 0x1fc   :  { %v1924_v31 = vpop.f32.mrb[0].mxu1 }
 0x1fd   :  { %v1925_v13 = vpop.f32.mrb[1].mxu1 }
 0x1fe   :  { %v1926_v49 = vadd.f32 %v1925_v13, %v1924_v31  ;;  %v1927_v15 = vpop.f32.mrb[2].mxu1 }
 0x1ff   :  { %v1928_v43 = vpop.f32.mrb[3].mxu1 }
 0x200   :  { %v1929_v32 = vadd.f32 %v1928_v43, %v1927_v15 }
 0x202   :  { %v1131_v23 = vpack.c.bf16 %v1929_v32, %v1926_v49  ;;  %v1278_v49 = vpop.permute.xlu0 %1277  ;;  %v1290_v32 = vpop.permute.xlu1 %1289 }
 0x203   :  { %v1298_v34 = vrot.slane %v1290_v32, %v2510_v5 }
 0x204   :  { %v1395_v25 = vadd.bf16 %v1861_v17, %v1131_v23  ;;  %v1930_v35 = vpop.f32.mrb[4].mxu1  ;;  %v1286_v23 = vrot.slane %v1278_v49, %v2510_v5 }
 0x205   :  { %v1931_v19 = vpop.f32.mrb[5].mxu1 }
 0x206   :  { %v1932_v61 = vadd.f32 %v1931_v19, %v1930_v35  ;;  %v1933_v2 = vpop.f32.mrb[6].mxu1  ;;  %v1403_v38 = vmax.bf16 %v2119_v0, %v1395_v25  ;;  %v1866_v58 = vcombine.low %v1286_v23, %v1298_v34 }
 0x207   :  { %v1934_v12 = vpop.f32.mrb[7].mxu1 }
 0x208   :  { %v1935_v40 = vadd.f32 %v1934_v12, %v1933_v2  ;;  %2026 = vmatprep.subr.bf16.mxu0 %v1403_v38  ;;  %v1302_v2 = vpop.permute.xlu0 %1301 }
 0x209   :  { %2027 = vmatpush3.bf16.msra.mxu0 %v1403_v38 }
 0x20a   :  { %v1132_v21 = vpack.c.bf16 %v1935_v40, %v1932_v61  ;;  %v1314_v40 = vpop.permute.xlu1 %1313 }
 0x20b   :  { %v1322_v22 = vrot.slane %v1314_v40, %v2510_v5 }
 0x20c   :  { %v1396_v16 = vadd.bf16 %v1862_v20, %v1132_v21  ;;  %v1936_v24 = vpop.f32.mrb[8].mxu1  ;;  %v1310_v21 = vrot.slane %v1302_v2, %v2510_v5 }
 0x20d   :  { %v1937_v39 = vpop.f32.mrb[9].mxu1 }
 0x20e   :  { %v1938_v27 = vadd.f32 %v1937_v39, %v1936_v24  ;;  %v1939_v37 = vpop.f32.mrb[10].mxu1  ;;  %v1404_v54 = vmax.bf16 %v2119_v0, %v1396_v16  ;;  %v1867_v26 = vcombine.low %v1310_v21, %v1322_v22 }
 0x20f   :  { %v1940_v59 = vpop.f32.mrb[11].mxu1 }
 0x210   :  { %v1941_v60 = vadd.f32 %v1940_v59, %v1939_v37  ;;  %2028 = vmatprep.subr.bf16.mxu0 %v1404_v54  ;;  %v1326_v37 = vpop.permute.xlu0 %1325 }
 0x211   :  { %2029 = vmatpush3.bf16.msra.mxu0 %v1404_v54 }
 0x212   :  { %v1133_v45 = vpack.c.bf16 %v1941_v60, %v1938_v27  ;;  %v1338_v60 = vpop.permute.xlu1 %1337 }
 0x213   :  { %v1346_v42 = vrot.slane %v1338_v60, %v2510_v5 }
 0x214   :  { %v1397_v47 = vadd.bf16 %v1863_v28, %v1133_v45  ;;  %v1942_v55 = vpop.f32.mrb[12].mxu1  ;;  %v1334_v45 = vrot.slane %v1326_v37, %v2510_v5  ;;  %v1523_v57 = vpop.permute.xlu0 %1522 }
 0x215   :  { %v1943_v46 = vpop.f32.mrb[13].mxu1  ;;  %v1531_v30 = vrot.slane %v1523_v57, %v2510_v5 }
 0x216   :  { %v1944_v14 = vadd.f32 %v1943_v46, %v1942_v55  ;;  %v1945_v4 = vpop.f32.mrb[14].mxu1  ;;  %v1405_v8 = vmax.bf16 %v2119_v0, %v1397_v47  ;;  %v1868_v11 = vcombine.low %v1334_v45, %v1346_v42 }
 0x217   :  { %v1946_v10 = vpop.f32.mrb[15].mxu1 }
 0x218   :  { %v1947_v50 = vadd.f32 %v1946_v10, %v1945_v4  ;;  %2030 = vmatprep.subr.bf16.mxu0 %v1405_v8  ;;  %v2114_v10 = vld [vmem:[%s2742_s5 + $0x8] sm:$0xff]  }
 0x219   :  { %2031 = vmatpush3.bf16.msra.mxu0 %v1405_v8 }
 0x21a   :  { %v1134_v56 = vpack.c.bf16 %v1947_v50, %v1944_v14  ;;  %v2115_v50 = vld [vmem:[%s2742_s5 + $0x10] sm:$0xff]  }
 0x21c   :  { %v1398_v52 = vadd.bf16 %v1864_v51, %v1134_v56  ;;  %v1948_v1 = vpop.f32.mrb[16].mxu1  ;;  %v2116_v51 = vld [vmem:[%s2742_s5 + $0x18] sm:$0xff]   ;;  %v2117_v56 = vld [vmem:[%s2743_s7] sm:$0xff]  }
 0x21d   :  { %v1949_v62 = vpop.f32.mrb[17].mxu1 }
 0x21e   :  { %v1950_v7 = vadd.f32 %v1949_v62, %v1948_v1  ;;  %v1951_v9 = vpop.f32.mrb[18].mxu1  ;;  %v1406_v31 = vmax.bf16 %v2119_v0, %v1398_v52  ;;  %v1535_v52 = vpop.permute.xlu1 %1534 }
 0x21f   :  { %v1952_v63 = vpop.f32.mrb[19].mxu1  ;;  %v1547_v1 = vpop.permute.xlu0 %1546 }
 0x220   :  { %v1953_v13 = vadd.f32 %v1952_v63, %v1951_v9  ;;  %2032 = vmatprep.subr.bf16.mxu0 %v1406_v31  ;;  %v1555_v9 = vrot.slane %v1547_v1, %v2510_v5 }
 0x221   :  { %2033 = vmatpush3.bf16.msra.mxu0 %v1406_v31 }
 0x222   :  { %v1135_v48 = vpack.c.bf16 %v1953_v13, %v1950_v7  ;;  %v1559_v3 = vpop.permute.xlu1 %1558  ;;  %v1543_v7 = vrot.slane %v1535_v52, %v2510_v5 }
 0x223   :  { %v1571_v62 = vpop.permute.xlu0 %1570  ;;  %v1567_v31 = vrot.slane %v1559_v3, %v2510_v5 }
 0x224   :  { %v1399_v15 = vadd.bf16 %v1865_v44, %v1135_v48  ;;  %v1954_v43 = vpop.f32.mrb[20].mxu1 }
 0x225   :  { %v1955_v17 = vpop.f32.mrb[21].mxu1 }
 0x226   :  { %v1956_v25 = vadd.f32 %v1955_v17, %v1954_v43  ;;  %v1957_v35 = vpop.f32.mrb[22].mxu1  ;;  %v1407_v18 = vmax.bf16 %v2119_v0, %v1399_v15  ;;  %v1583_v53 = vpop.permute.xlu1 %1582  ;;  %v1873_v15 = vcombine.low %v1531_v30, %v1543_v7  ;;  %v1874_v43 = vcombine.low %v1555_v9, %v1567_v31 }
 0x227   :  { %v1958_v19 = vpop.f32.mrb[23].mxu1  ;;  %v1595_v17 = vpop.permute.xlu0 %1594 }
 0x228   :  { %v1959_v33 = vadd.f32 %v1958_v19, %v1957_v35  ;;  %2034 = vmatprep.subr.bf16.mxu0 %v1407_v18  ;;  %v1579_v35 = vrot.slane %v1571_v62, %v2510_v5  ;;  %v1603_v19 = vrot.slane %v1595_v17, %v2510_v5 }
 0x229   :  { %2035 = vmatpush3.bf16.msra.mxu0 %v1407_v18  ;;  %v1591_v18 = vrot.slane %v1583_v53, %v2510_v5 }
 0x22a   :  { %v1136_v61 = vpack.c.bf16 %v1959_v33, %v1956_v25  ;;  %v1607_v23 = vpop.permute.xlu1 %1606 }
 0x22b   :  { %v1615_v33 = vrot.slane %v1607_v23, %v2510_v5  ;;  %v1875_v21 = vcombine.low %v1579_v35, %v1591_v18 }
 0x22c   :  { %v1400_v38 = vadd.bf16 %v1866_v58, %v1136_v61  ;;  %v1960_v12 = vpop.f32.mrb[24].mxu1 }
 0x22d   :  { %v1961_v20 = vpop.f32.mrb[25].mxu1  ;;  %v1876_v22 = vcombine.low %v1603_v19, %v1615_v33 }
 0x22e   :  { %v1962_v16 = vadd.f32 %v1961_v20, %v1960_v12  ;;  %v1963_v24 = vpop.f32.mrb[26].mxu1  ;;  %v1408_v36 = vmax.bf16 %v2119_v0, %v1400_v38 }
 0x22f   :  { %v1964_v39 = vpop.f32.mrb[27].mxu1 }
 0x230   :  { %v1965_v41 = vadd.f32 %v1964_v39, %v1963_v24  ;;  %2036 = vmatprep.subr.bf16.mxu0 %v1408_v36 }
 0x231   :  { %2037 = vmatpush3.bf16.msra.mxu0 %v1408_v36 }
 0x232   :  { %v1137_v27 = vpack.c.bf16 %v1965_v41, %v1962_v16  ;;  %v2118_v41 = vld [vmem:[%s2743_s7 + $0x8] sm:$0xff]  }
 0x234   :  { %v1401_v54 = vadd.bf16 %v1867_v26, %v1137_v27  ;;  %v1966_v59 = vpop.f32.mrb[28].mxu1  ;;  %v1659_v26 = vpop.permute.xlu0 %1658 }
 0x235   :  { %v1967_v28 = vpop.f32.mrb[29].mxu1  ;;  %v1664_v27 = vpop.permute.xlu1 %1663 }
 0x236   :  { %v1968_v47 = vadd.f32 %v1967_v28, %v1966_v59  ;;  %v1969_v55 = vpop.f32.mrb[30].mxu1  ;;  %v1409_v29 = vmax.bf16 %v2119_v0, %v1401_v54 }
 0x237   :  { %v1970_v46 = vpop.f32.mrb[31].mxu1 }
 0x238   :  { %v1971_v6 = vadd.f32 %v1970_v46, %v1969_v55  ;;  %2038 = vmatprep.subr.bf16.mxu0 %v1409_v29  ;;  %v1669_v37 = vpop.permute.xlu0 %1668 }
 0x239   :  { %2039 = vmatpush3.bf16.msra.mxu0 %v1409_v29  ;;  %v1674_v60 = vpop.permute.xlu1 %1673 }
 0x23a   :  { %v1138_v14 = vpack.c.bf16 %v1971_v6, %v1968_v47 }
 0x23c   :  { %v1402_v4 = vadd.bf16 %v1868_v11, %v1138_v14  ;;  %v2068_v47 = vpop.permute.xlu0 %2067 }
 0x23d   :  { %v2070_v6 = vunpack.i.h.bf16 %v2068_v47  ;;  %v2069_v11 = vunpack.i.l.bf16 %v2068_v47 }
 0x23e   :  { %v1410_v8 = vmax.bf16 %v2119_v0, %v1402_v4 }
 0x240   :  { %2040 = vmatprep.subr.bf16.mxu0 %v1410_v8  ;;  %v1772_v52 = vpop.permute.xlu0 %1771 }
 0x241   :  { %2041 = vmatpush3.bf16.msra.mxu0 %v1410_v8 }
 0x244   :  { %2043 = vmatmul.mubr.bf16.vlgmr.msra.gmra.mrb[32].mxu0 %v2114_v10 }
 0x245   :  { %2046 = vmatprep.mubr.bf16.mxu0 %v2115_v50 }
 0x24c   :  { %2047 = vmatmul.mubr.bf16.gmra.mrb[36].mxu0 %v2116_v51  ;;  %v1767_v51 = vpop.permute.xlu1 %1766 }
 0x24d   :  { %2058 = vmatprep.mubr.msk.bf16.mxu0 %vm1686_vm1, %v2117_v56 }
 0x317   :  { %v2044_v63 = vpop.f32.mrb[32].mxu0 }
 0x318   :  { %v1477_v13 = vpop.f32.mrb[33].mxu0 }
 0x319   :  { %v2045_v44 = vpop.f32.mrb[34].mxu0 }
 0x31a   :  { %v1509_v48 = vpack.c.bf16 %v2045_v44, %v2044_v63  ;;  %v1480_v49 = vpop.f32.mrb[35].mxu0  ;;  %v1788_v63 = vstv %s2744_s10 }
 0x31b   :  { %v1508_v32 = vpack.c.bf16 %v1480_v49, %v1477_v13 }
 0x31c   :  { %v1641_v34 = vadd.bf16 %v1874_v43, %v1509_v48 }
 0x31d   :  { %v1640_v25 = vadd.bf16 %v1873_v15, %v1508_v32 }
 0x31e   :  { %v1645_v12 = vmax.bf16 %v2119_v0, %v1641_v34 }
 0x31f   :  { %v2048_v58 = vpop.f32.mrb[36].mxu0  ;;  %v1644_v61 = vmax.bf16 %v2119_v0, %v1640_v25 }
 0x320   :  { %v1493_v2 = vpop.f32.mrb[37].mxu0 }
 0x321   :  { %v2049_v38 = vpop.f32.mrb[38].mxu0  ;;  %2050 = vmatprep.subr.bf16.mxu0 %v1644_v61 }
 0x322   :  { %v1511_v40 = vpack.c.bf16 %v2049_v38, %v2048_v58  ;;  %v1496_v20 = vpop.f32.mrb[39].mxu0  ;;  %2051 = vmatpush3.bf16.msra.mxu0 %v1644_v61 }
 0x323   :  { %v1510_v16 = vpack.c.bf16 %v1496_v20, %v1493_v2  ;;  %2052 = vmatprep.subr.bf16.mxu0 %v1645_v12 }
 0x324   :  { %v1643_v24 = vadd.bf16 %v1876_v22, %v1511_v40 }
 0x325   :  { %v1642_v36 = vadd.bf16 %v1875_v21, %v1510_v16 }
 0x326   :  { %2053 = vmatpush3.bf16.msra.mxu0 %v1645_v12  ;;  %v1647_v39 = vmax.bf16 %v2119_v0, %v1643_v24 }
 0x327   :  { %v1646_v5 = vmax.bf16 %v2119_v0, %v1642_v36 }
 0x329   :  { %2054 = vmatprep.subr.bf16.mxu0 %v1646_v5 }
 0x32a   :  { %2055 = vmatpush3.bf16.msra.mxu0 %v1646_v5 }
 0x32b   :  { %2056 = vmatprep.subr.bf16.mxu0 %v1647_v39 }
 0x32e   :  { %2057 = vmatpush3.bf16.msra.mxu0 %v1647_v39 }
 0x331   :  { %2059 = vmatmul.mubr.msk.bf16.vlgmr.msra.gmra.mrb[40].mxu0 %vm1686_vm1, %v2118_v41 }
 0x404   :  { %v2060_v54 = vpop.f32.mrb[40].mxu0 }
 0x405   :  { %v1727_v59 = vpop.f32.mrb[41].mxu0  ;;  %v1736_v28 = vadd.f32 %v2060_v54, %v1669_v37 }
 0x406   :  { %v1728_v45 = vadd.f32 %v1727_v59, %v1659_v26  ;;  %v2061_v42 = vpop.f32.mrb[42].mxu0 }
 0x407   :  { %v1730_v0 = vpop.f32.mrb[43].mxu0  ;;  %v1739_v29 = vadd.f32 %v2061_v42, %v1674_v60  ;;  %v1744_v14 = vmax.f32 %v1736_v28, 0.0 }
 0x408   :  { %v1742_v55 = vmax.f32 %v1728_v45, 0.0  ;;  %v1731_v46 = vadd.f32 %v1730_v0, %v1664_v27 }
 0x409   :  { %v1745_v10 = vmax.f32 %v1739_v29, 0.0  ;;  %v1776_v56 = vmul.f32 %v1767_v51, %v1744_v14 }
 0x40a   :  { %v1743_v4 = vmax.f32 %v1731_v46, 0.0  ;;  %v1774_v8 = vmul.f32 %v2069_v11, %v1742_v55 }
 0x40b   :  { %v1777_v1 = vmul.f32 %v1772_v52, %v1745_v10 }
 0x40c   :  { %v1775_v50 = vmul.f32 %v2070_v6, %v1743_v4 }
 0x40e   :  { %v1778_v57 = vadd.f32 %v1775_v50, %v1774_v8 }
 0x410   :  { %v1779_v3 = vadd.f32 %v1778_v57, %v1776_v56 }
 0x412   :  { %v1780_v62 = vadd.f32 %v1779_v3, %v1777_v1 }
 0x414   :  { %v1781_v53 = vrot.slane %v1780_v62, 4 }
 0x416   :  { %v1782_v30 = vadd.f32 %v1781_v53, %v1780_v62 }
 0x418   :  { %v1783_v7 = vrot.slane %v1782_v30, 2 }
 0x41a   :  { %v1784_v9 = vadd.f32 %v1783_v7, %v1782_v30 }
 0x41c   :  { %v1785_v31 = vrot.slane %v1784_v9, 1 }
 0x41e   :  { %v1786_v13 = vadd.f32 %v1785_v31, %v1784_v9 }
 0x420   :  { %v1789_v44 = vadd.f32 %v1788_v63, %v1786_v13 }
 0x422   :  { %1790 = vst [vmem:[%s2745_s11] sm:$0x1] %v1789_v44 }

</bundles_post_ra>
